<compile_context>
chip_gen: v7x
topology: tpu7x:2x2x1
jax: 0.10.0
libtpu: 0.0.40
codegen_flags: <defaults>
</compile_context>

<pallas_src>
import jax
import jax.numpy as jnp
from jax.experimental import pallas as pl
from jax.experimental.pallas import tpu as pltpu


def _round_up(x: int, m: int) -> int:
    return ((x + m - 1) // m) * m


# ----------------------------- fast path (weight resident) -----------------------------
def _kernel_resident(h_ref, w_ref, b_ref, res_ref, o_ref):
    # h_ref:   (tm, I)   tile of flattened hidden_states
    # w_ref:   (I,  Hp)  full dense weight (torch Linear weight.T), Hp = H padded to 128
    # b_ref:   (1,  Hp)  dense bias
    # res_ref: (tm, Hp)  tile of flattened residual (input_tensor)
    # o_ref:   (tm, Hp)
    acc = jnp.dot(h_ref[...], w_ref[...], preferred_element_type=jnp.float32)
    # Fold bias into the residual first (one broadcast add in input dtype), then one f32 add.
    bias_plus_res = b_ref[...] + res_ref[...]
    o_ref[...] = (acc + bias_plus_res.astype(jnp.float32)).astype(o_ref.dtype)


# ----------------------------- K-split path (reduction axis) ---------------------------
def _kernel_ksplit(h_ref, w_ref, b_ref, res_ref, o_ref, acc_ref):
    # grid = (rows, K);  K is the contraction ("arbitrary") axis.
    k = pl.program_id(1)

    @pl.when(k == 0)
    def _():
        acc_ref[...] = jnp.zeros_like(acc_ref)

    acc_ref[...] += jnp.dot(h_ref[...], w_ref[...], preferred_element_type=jnp.float32)

    @pl.when(k == pl.num_programs(1) - 1)
    def _():
        bias_plus_res = b_ref[...] + res_ref[...]
        o_ref[...] = (acc_ref[...] + bias_plus_res.astype(jnp.float32)).astype(o_ref.dtype)


def vit_diffmae_output(hidden_states, input_tensor, weight, bias, *,
                       tm=256, tk=512, force_k_split=False):
    """hidden_states: (B, S, I), input_tensor: (B, S, H),
    weight: (I, H)  (== torch Linear weight.T), bias: (H,).
    Dropout is identity in eval mode, so it is omitted."""
    B, S, I = hidden_states.shape
    H = input_tensor.shape[-1]
    assert weight.shape == (I, H) and bias.shape == (H,)
    M = B * S
    out_dtype = hidden_states.dtype
    bytes_per = jnp.dtype(out_dtype).itemsize

    # Lane-dense output: pad H to a multiple of 128 (no-op for real ViT H=768/1024).
    Hp = _round_up(H, 128)
    # Row tile: multiple of 16, never smaller than 16.
    tm = max(16, _round_up(min(tm, M), 16))
    Mp = _round_up(M, tm)

    h2 = hidden_states.reshape(M, I)
    r2 = input_tensor.reshape(M, H)
    b2 = bias.reshape(1, H)
    w2 = weight

    if Mp != M:
        h2 = jnp.pad(h2, ((0, Mp - M), (0, 0)))
        r2 = jnp.pad(r2, ((0, Mp - M), (0, 0)))
    if Hp != H:
        r2 = jnp.pad(r2, ((0, 0), (0, Hp - H)))
        b2 = jnp.pad(b2, ((0, 0), (0, Hp - H)))
        w2 = jnp.pad(w2, ((0, 0), (0, Hp - H)))

    # ---- decide between fast path (fully-resident weight) and K-split path ----
    # Fast-path VMEM: double-buffered h tile + residual tile + out tile, resident weight, bias.
    fast_vmem = bytes_per * (2 * tm * I + 2 * tm * Hp + 2 * tm * Hp + 2 * I * Hp + 2 * Hp)
    VMEM_BUDGET = 40 << 20  # leave headroom even on v7x (64 MiB physical)
    use_ksplit = force_k_split or (fast_vmem > VMEM_BUDGET)

    cost = pl.CostEstimate(
        flops=2 * Mp * I * Hp,
        transcendentals=0,
        bytes_accessed=(Mp * I + I * Hp + 2 * Mp * Hp + Hp) * bytes_per,
    )

    if not use_ksplit:
        vmem_limit = int(min(max(fast_vmem + (2 << 20), 16 << 20), 64 << 20))
        out = pl.pallas_call(
            _kernel_resident,
            out_shape=jax.ShapeDtypeStruct((Mp, Hp), out_dtype),
            grid_spec=pltpu.PrefetchScalarGridSpec(
                num_scalar_prefetch=0,
                grid=(Mp // tm,),
                in_specs=[
                    pl.BlockSpec((tm, I), lambda i: (i, 0)),    # hidden_states row tile
                    pl.BlockSpec((I, Hp), lambda i: (0, 0)),    # full weight (resident)
                    pl.BlockSpec((1, Hp), lambda i: (0, 0)),    # bias
                    pl.BlockSpec((tm, Hp), lambda i: (i, 0)),   # residual row tile
                ],
                out_specs=pl.BlockSpec((tm, Hp), lambda i: (i, 0)),
            ),
            compiler_params=pltpu.CompilerParams(
                dimension_semantics=("parallel",),
                vmem_limit_bytes=vmem_limit,
            ),
            cost_estimate=cost,
        )(h2, w2, b2, r2)
    else:
        # K-split: tile the contraction dim; zero-pad I up to a multiple of tk (adds zeros).
        tk = max(128, _round_up(min(tk, I), 128))
        Ip = _round_up(I, tk)
        if Ip != I:
            h2 = jnp.pad(h2, ((0, 0), (0, Ip - I)))
            w2 = jnp.pad(w2, ((0, Ip - I), (0, 0)))

        ks_vmem = bytes_per * (2 * tm * tk + 2 * tk * Hp + 2 * tm * Hp + 2 * tm * Hp + 2 * Hp) \
                  + 4 * tm * Hp  # f32 accumulator scratch
        vmem_limit = int(min(max(ks_vmem + (2 << 20), 16 << 20), 64 << 20))

        out = pl.pallas_call(
            _kernel_ksplit,
            out_shape=jax.ShapeDtypeStruct((Mp, Hp), out_dtype),
            grid_spec=pltpu.PrefetchScalarGridSpec(
                num_scalar_prefetch=0,
                grid=(Mp // tm, Ip // tk),
                in_specs=[
                    pl.BlockSpec((tm, tk), lambda i, k: (i, k)),    # hidden_states tile
                    pl.BlockSpec((tk, Hp), lambda i, k: (k, 0)),    # weight K-slab
                    pl.BlockSpec((1, Hp), lambda i, k: (0, 0)),     # bias
                    pl.BlockSpec((tm, Hp), lambda i, k: (i, 0)),    # residual row tile
                ],
                out_specs=pl.BlockSpec((tm, Hp), lambda i, k: (i, 0)),
                scratch_shapes=[pltpu.VMEM((tm, Hp), jnp.float32)],
            ),
            compiler_params=pltpu.CompilerParams(
                dimension_semantics=("parallel", "arbitrary"),
                vmem_limit_bytes=vmem_limit,
            ),
            cost_estimate=cost,
        )(h2, w2, b2, r2)

    return out[:M, :H].reshape(B, S, H)


if __name__ == "__main__":
    key = jax.random.PRNGKey(0)
    k1, k2, k3, k4 = jax.random.split(key, 4)

    # --- Case 1: small ViT-like config in f32 (fast path, strict correctness check) ---
    B, S, HID, INTER = 2, 8, 32, 128
    hidden_states = jax.random.normal(k1, (B, S, INTER), dtype=jnp.float32)
    input_tensor = jax.random.normal(k2, (B, S, HID), dtype=jnp.float32)
    weight = jax.random.normal(k3, (INTER, HID), dtype=jnp.float32) * 0.02
    bias = jax.random.normal(k4, (HID,), dtype=jnp.float32) * 0.02

    out = vit_diffmae_output(hidden_states, input_tensor, weight, bias)
    out = jax.block_until_ready(out)
    ref = jnp.einsum("bsi,ih->bsh", hidden_states, weight) + bias + input_tensor
    assert out.shape == (B, S, HID)
    assert jnp.allclose(out, ref, atol=1e-4, rtol=1e-4)

    # --- Case 2: bf16 inputs, non-divisible token count (exercises row/lane padding) ---
    B2, S2, HID2, INTER2 = 2, 9, 32, 128   # M = 18 -> padded rows; H = 32 -> padded lanes
    h_bf = jax.random.normal(k1, (B2, S2, INTER2), dtype=jnp.float32).astype(jnp.bfloat16)
    r_bf = jax.random.normal(k2, (B2, S2, HID2), dtype=jnp.float32).astype(jnp.bfloat16)
    w_bf = (jax.random.normal(k3, (INTER2, HID2), dtype=jnp.float32) * 0.02).astype(jnp.bfloat16)
    b_bf = (jax.random.normal(k4, (HID2,), dtype=jnp.float32) * 0.02).astype(jnp.bfloat16)

    out_bf = vit_diffmae_output(h_bf, r_bf, w_bf, b_bf)
    out_bf = jax.block_until_ready(out_bf)
    ref_bf = (
        jnp.einsum("bsi,ih->bsh",
                   h_bf.astype(jnp.float32), w_bf.astype(jnp.float32))
        + b_bf.astype(jnp.float32) + r_bf.astype(jnp.float32)
    )
    assert out_bf.shape == (B2, S2, HID2)
    assert jnp.allclose(out_bf.astype(jnp.float32), ref_bf, atol=1e-1, rtol=1e-1)

    # --- Case 3: force the K-split (reduction grid axis) path at small shapes ---
    B3, S3, HID3, INTER3 = 2, 8, 32, 256   # tk=128 -> 2 K steps
    h3 = jax.random.normal(k1, (B3, S3, INTER3), dtype=jnp.float32)
    r3 = jax.random.normal(k2, (B3, S3, HID3), dtype=jnp.float32)
    w3 = jax.random.normal(k3, (INTER3, HID3), dtype=jnp.float32) * 0.02
    b3 = jax.random.normal(k4, (HID3,), dtype=jnp.float32) * 0.02

    out3 = vit_diffmae_output(h3, r3, w3, b3, tk=128, force_k_split=True)
    out3 = jax.block_until_ready(out3)
    ref3 = jnp.einsum("bsi,ih->bsh", h3, w3) + b3 + r3
    assert out3.shape == (B3, S3, HID3)
    assert jnp.allclose(out3, ref3, atol=1e-4, rtol=1e-4)

    # TODO(synk): dropout in training mode (p > 0) would need pltpu.prng_seed + stateful_bernoulli;
    # eval-mode forward (identity dropout) is implemented here.
    print("KERNEL_OK")
</pallas_src>

<mosaic_0001>
module attributes {stable_mosaic.version = 11 : i64} {
  func.func @_kernel_resident(%arg0: i32, %arg1: memref<16x128xf32, #tpu.memory_space<vmem>>, %arg2: memref<128x128xf32, #tpu.memory_space<vmem>>, %arg3: memref<1x128xf32, #tpu.memory_space<vmem>>, %arg4: memref<16x128xf32, #tpu.memory_space<vmem>>, %arg5: memref<16x128xf32, #tpu.memory_space<vmem>>) attributes {dimension_semantics = [#tpu.dimension_semantics<parallel>], iteration_bounds = array<i64: 1>, scalar_prefetch = 0 : i64, scratch_operands = 0 : i64, tpu.core_type = #tpu.core_type<tc>, window_params = [{transform_indices = @transform_0, window_bounds = array<i64: 16, 128>}, {pipeline_mode = #tpu.pipeline_mode<synchronous>, transform_indices = @transform_1, window_bounds = array<i64: 128, 128>}, {pipeline_mode = #tpu.pipeline_mode<synchronous>, transform_indices = @transform_2, window_bounds = array<i64: 1, 128>}, {transform_indices = @transform_3, window_bounds = array<i64: 16, 128>}, {transform_indices = @transform_4, window_bounds = array<i64: 16, 128>}]} {
    %c0 = arith.constant 0 : index
    %c0_0 = arith.constant 0 : index
    %0 = vector.load %arg1[%c0, %c0_0] : memref<16x128xf32, #tpu.memory_space<vmem>>, vector<16x128xf32>
    %c0_1 = arith.constant 0 : index
    %c0_2 = arith.constant 0 : index
    %1 = vector.load %arg2[%c0_1, %c0_2] : memref<128x128xf32, #tpu.memory_space<vmem>>, vector<128x128xf32>
    %cst = arith.constant dense<0.000000e+00> : vector<16x128xf32>
    %2 = tpu.matmul %0, %1, %cst {dimension_numbers = #tpu.dot_dimension_numbers<[1], [0], [0], [1], [0, 0, 1, 1], [], []>} : vector<16x128xf32>, vector<128x128xf32>, vector<16x128xf32> -> vector<16x128xf32>
    %c0_3 = arith.constant 0 : index
    %c0_4 = arith.constant 0 : index
    %3 = vector.load %arg3[%c0_3, %c0_4] : memref<1x128xf32, #tpu.memory_space<vmem>>, vector<1x128xf32>
    %c0_5 = arith.constant 0 : index
    %c0_6 = arith.constant 0 : index
    %4 = vector.load %arg4[%c0_5, %c0_6] : memref<16x128xf32, #tpu.memory_space<vmem>>, vector<16x128xf32>
    %5 = vector.broadcast %3 : vector<1x128xf32> to vector<16x128xf32>
    %6 = arith.addf %5, %4 : vector<16x128xf32>
    %7 = arith.addf %2, %6 : vector<16x128xf32>
    %c0_7 = arith.constant 0 : index
    %c0_8 = arith.constant 0 : index
    %8 = vector.load %arg5[%c0_7, %c0_8] : memref<16x128xf32, #tpu.memory_space<vmem>>, vector<16x128xf32>
    tpu.vector_store %arg5[%c0_7, %c0_8], %7 {strides = array<i32>} : memref<16x128xf32, #tpu.memory_space<vmem>>, vector<16x128xf32>,
    return
  }
  func.func @transform_0(%arg0: i32) -> (i32, i32) {
    %c0_i32 = arith.constant 0 : i32
    %c0_i32_0 = arith.constant 0 : i32
    return %arg0, %c0_i32 : i32, i32
  }
  func.func @transform_1(%arg0: i32) -> (i32, i32) {
    %c0_i32 = arith.constant 0 : i32
    %c0_i32_0 = arith.constant 0 : i32
    %c0_i32_1 = arith.constant 0 : i32
    return %c0_i32, %c0_i32_0 : i32, i32
  }
  func.func @transform_2(%arg0: i32) -> (i32, i32) {
    %c0_i32 = arith.constant 0 : i32
    %c0_i32_0 = arith.constant 0 : i32
    %c0_i32_1 = arith.constant 0 : i32
    return %c0_i32, %c0_i32_0 : i32, i32
  }
  func.func @transform_3(%arg0: i32) -> (i32, i32) {
    %c0_i32 = arith.constant 0 : i32
    %c0_i32_0 = arith.constant 0 : i32
    return %arg0, %c0_i32 : i32, i32
  }
  func.func @transform_4(%arg0: i32) -> (i32, i32) {
    %c0_i32 = arith.constant 0 : i32
    %c0_i32_0 = arith.constant 0 : i32
    return %arg0, %c0_i32 : i32, i32
  }
}

</mosaic_0001>

<bundles_post_ra>
// kernel: tpu_custom_call.1
= control target key start
LH: loop header
LB: loop body
LE: loop exit
PB: predicated region body
PF: predicated region fallthrough
CT: control target
= control target key end

     0   :  { %9 = vsyncpa [#allocation3], 0  ;;  %s470_s0 = inlined_call_operand.hbm [shape: f32[16,128], index: 0, kind: input, shape index: {}]   ;;  %s471_s1 = inlined_call_operand.hbm [shape: f32[128,128], index: 1, kind: input, shape index: {}]   ;;  %s472_s2 = inlined_call_operand.vmem [shape: f32[1,128], index: 2, kind: input, shape index: {}]   ;;  %s473_s3 = inlined_call_operand.hbm [shape: f32[16,128], index: 3, kind: input, shape index: {}]   ;;  %s474_s4 = inlined_call_operand.hbm [shape: f32[16,128], index: 4, kind: output, shape index: {}]  }
   0x1   :  { %10 = vsyncpa [#allocation6], 0 }
   0x2   :  { %11 = vsyncpa [#allocation4], 0  ;;  %s369_s15 = smov [#allocation5]   ;;  %s370_s17 = smov [#allocation2]  }
   0x3   :  { %s29_s16 = sshll.u32 %s369_s15, 4  ;;  %s17_s18 = sshll.u32 %s370_s17, 4  ;;  %s30_s16 = int_to_ptr.vmem [resolvable:$true] %s29_s16  ;;  %s400_s18 = int_to_ptr.vmem [resolvable:$true] %s17_s18 }
   0x4   :  { %s275_s21 = scalar_lea.hbm %s471_s1, 2048 }
   0x5   :  { %p276_p0 = scmp.ne.s32.totalorder %s471_s1, %s275_s21  ;;  %p279_p1 = scmp.lt.u32.totalorder %s275_s21, %s471_s1 }
   0x7   :  { %p281_p2 = pnand %p279_p1, %p276_p0 }
   0x9   :  { %284 = shalt.err (!%p281_p2)
}
   0xa   :  { %s285_s26 = scalar_lea.vmem %s30_s16, 2048  ;;  %p290_p4 = scmp.lt.s32.totalorder %s30_s16, %s30_s16 }
   0xb   :  { %p286_p3 = scmp.ne.s32.totalorder %s30_s16, %s285_s26  ;;  %p291_p5 = scmp.lt.s32.totalorder %s285_s26, %s285_s26 }
   0xd   :  { %p292_p6 = por %p291_p5, %p290_p4 }
   0xf   :  { %p293_p7 = pnand %p292_p6, %p286_p3 }
  0x11   :  { %296 = shalt.err (!%p293_p7)
}
  0x12   :  { %s371_s27 = smov 128   ;;  %s372_s28 = smov 8  }
  0x13   :  { %35 = dma.hbm_to_vmem [thread:$0]  %s471_s1, 2048, %s30_s16, [#allocation6], %s371_s27, %s371_s27, %s372_s28  }
  0x14   :  { %s297_s7 = scalar_lea.hbm %s470_s0, 256 }
  0x15   :  { %p298_p8 = scmp.ne.s32.totalorder %s470_s0, %s297_s7  ;;  %p301_p9 = scmp.lt.u32.totalorder %s297_s7, %s470_s0 }
  0x17   :  { %p303_p10 = pnand %p301_p9, %p298_p8 }
  0x19   :  { %306 = shalt.err (!%p303_p10)
}
  0x1a   :  { %s307_s12 = scalar_lea.vmem %s400_s18, 256  ;;  %p312_p12 = scmp.lt.s32.totalorder %s400_s18, %s400_s18 }
  0x1b   :  { %p308_p11 = scmp.ne.s32.totalorder %s400_s18, %s307_s12  ;;  %p313_p13 = scmp.lt.s32.totalorder %s307_s12, %s307_s12 }
  0x1d   :  { %p314_p0 = por %p313_p13, %p312_p12 }
  0x1f   :  { %p315_p1 = pnand %p314_p0, %p308_p11 }
  0x21   :  { %318 = shalt.err (!%p315_p1)
}
  0x22   :  { %23 = dma.hbm_to_vmem [thread:$0]  %s470_s0, 256, %s400_s18, [#allocation3], %s371_s27, %s371_s27, %s372_s28  }
  0x23   :  { %s373_s14 = smov [#allocation7]   ;;  %s319_s19 = scalar_lea.hbm %s473_s3, 256 }
  0x24   :  { %s43_s15 = sshll.u32 %s373_s14, 4  ;;  %p320_p2 = scmp.ne.s32.totalorder %s473_s3, %s319_s19  ;;  %s44_s15 = int_to_ptr.vmem [resolvable:$true] %s43_s15 }
  0x25   :  { %p323_p3 = scmp.lt.u32.totalorder %s319_s19, %s473_s3 }
  0x27   :  { %p325_p4 = pnand %p323_p3, %p320_p2 }
  0x29   :  { %328 = shalt.err (!%p325_p4)
}
  0x2a   :  { %s329_s24 = scalar_lea.vmem %s44_s15, 256  ;;  %p334_p6 = scmp.lt.s32.totalorder %s44_s15, %s44_s15 }
  0x2b   :  { %p330_p5 = scmp.ne.s32.totalorder %s44_s15, %s329_s24  ;;  %p335_p7 = scmp.lt.s32.totalorder %s329_s24, %s329_s24 }
  0x2d   :  { %p336_p8 = por %p335_p7, %p334_p6 }
  0x2f   :  { %p337_p9 = pnand %p336_p8, %p330_p5 }
  0x31   :  { %340 = shalt.err (!%p337_p9)
}
  0x32   :  { %49 = dma.hbm_to_vmem [thread:$0]  %s473_s3, 256, %s44_s15, [#allocation6], %s371_s27, %s371_s27, %s372_s28  }
  0x33   :  { %363 = dma.done.wait [#allocation3], 256  }
  0x34   :  { %364 = vsyncadd [#allocation3], 4294967040 }
  0x35   :  { %365 = dma.done.wait [#allocation6], 2304  }
  0x36   :  { %366 = vsyncadd [#allocation6], 4294964992  ;;  %v61_v0 = vld [vmem:[#allocation5] sm:$0xff]  ;;  %v62_v1 = vld [vmem:[#allocation5 + $0x8] sm:$0xff]  ;;  %s374_s26 = smov [#allocation8]  }
  0x37   :  { %v63_v2 = vld [vmem:[#allocation5 + $0x10] sm:$0xff]  ;;  %v237_v3 = vpack.c.bf16 %v62_v1, %v61_v0  ;;  %v64_v4 = vld [vmem:[#allocation5 + $0x18] sm:$0xff]  ;;  %v65_v6 = vld [vmem:[#allocation5 + $0x20] sm:$0xff]  ;;  %s170_s29 = sshll.u32 %s374_s26, 4  ;;  %s171_s29 = int_to_ptr.vmem [resolvable:$true] %s170_s29 }
  0x38   :  { %v241_v5 = vpack.c.bf16 %v64_v4, %v63_v2  ;;  %v66_v7 = vld [vmem:[#allocation5 + $0x28] sm:$0xff]  ;;  %v59_v9 = vld [vmem:[#allocation2] sm:$0xff]  ;;  %v68_v11 = vld [vmem:[#allocation5 + $0x38] sm:$0xff]  ;;  %s341_s30 = scalar_lea.vmem %s171_s29, 256  ;;  %p346_p11 = scmp.lt.s32.totalorder %s171_s29, %s171_s29 }
  0x39   :  { %238 = vmatprep.subr.bf16.mxu0 %v237_v3  ;;  %v245_v8 = vpack.c.bf16 %v66_v7, %v65_v6  ;;  %v67_v10 = vld [vmem:[#allocation5 + $0x30] sm:$0xff]  ;;  %234 = vmatprep.mubr.f32.mxu0 %v59_v9  ;;  %v69_v13 = vld [vmem:[#allocation5 + $0x40] sm:$0xff]  ;;  %v70_v14 = vld [vmem:[#allocation5 + $0x48] sm:$0xff]  ;;  %p342_p10 = scmp.ne.s32.totalorder %s171_s29, %s341_s30  ;;  %p347_p12 = scmp.lt.s32.totalorder %s341_s30, %s341_s30 }
  0x3a   :  { %240 = vmatpush3.bf16.msra.mxu0 %v237_v3  ;;  %v249_v12 = vpack.c.bf16 %v68_v11, %v67_v10  ;;  %v253_v15 = vpack.c.bf16 %v70_v14, %v69_v13  ;;  %v71_v16 = vld [vmem:[#allocation5 + $0x50] sm:$0xff]  ;;  %v72_v17 = vld [vmem:[#allocation5 + $0x58] sm:$0xff]  ;;  %v73_v19 = vld [vmem:[#allocation5 + $0x60] sm:$0xff] }
  0x3b   :  { %242 = vmatprep.subr.bf16.mxu0 %v241_v5  ;;  %v257_v18 = vpack.c.bf16 %v72_v17, %v71_v16  ;;  %v74_v20 = vld [vmem:[#allocation5 + $0x68] sm:$0xff]  ;;  %v75_v22 = vld [vmem:[#allocation5 + $0x70] sm:$0xff]  ;;  %v76_v23 = vld [vmem:[#allocation5 + $0x78] sm:$0xff]  ;;  %p348_p13 = por %p347_p12, %p346_p11 }
  0x3c   :  { %v261_v21 = vpack.c.bf16 %v74_v20, %v73_v19  ;;  %v265_v24 = vpack.c.bf16 %v76_v23, %v75_v22  ;;  %v60_v25 = vld [vmem:[#allocation2 + $0x8] sm:$0xff]  ;;  %v183_v26 = vld [vmem:[%s472_s2] ss:$0 sm:$0xff]  ;;  %v79_v27 = vld [vmem:[#allocation7 + $0x8] sm:$0xff] }
  0x3d   :  { %v78_v28 = vld [vmem:[#allocation7] sm:$0xff]  ;;  %v87_v29 = vadd.f32 %v183_v26, %v79_v27  ;;  %p349_p0 = pnand %p348_p13, %p342_p10 }
  0x3e   :  { %244 = vmatpush3.bf16.msra.mxu0 %v241_v5  ;;  %v86_v30 = vadd.f32 %v183_v26, %v78_v28 }
  0x3f   :  { %246 = vmatprep.subr.bf16.mxu0 %v245_v8 }
  0x42   :  { %248 = vmatpush3.bf16.msra.mxu0 %v245_v8 }
  0x43   :  { %250 = vmatprep.subr.bf16.mxu0 %v249_v12 }
  0x46   :  { %252 = vmatpush3.bf16.msra.mxu0 %v249_v12 }
  0x47   :  { %254 = vmatprep.subr.bf16.mxu0 %v253_v15 }
  0x4a   :  { %256 = vmatpush3.bf16.msra.mxu0 %v253_v15 }
  0x4b   :  { %258 = vmatprep.subr.bf16.mxu0 %v257_v18 }
  0x4e   :  { %260 = vmatpush3.bf16.msra.mxu0 %v257_v18 }
  0x4f   :  { %262 = vmatprep.subr.bf16.mxu0 %v261_v21 }
  0x52   :  { %264 = vmatpush3.bf16.msra.mxu0 %v261_v21 }
  0x53   :  { %266 = vmatprep.subr.bf16.mxu0 %v265_v24 }
  0x56   :  { %268 = vmatpush3.bf16.msra.mxu0 %v265_v24 }
  0x59   :  { %235 = vmatmul.mubr.f32.vlgmr.msra.gmra.mrb[0].mxu0 %v60_v25 }
 0x12c   :  { %v236_v31 = vpop.f32.mrb[0].mxu0 }
 0x12d   :  { %v160_v32 = vadd.f32 %v236_v31, %v87_v29  ;;  %v154_v33 = vpop.f32.mrb[1].mxu0 }
 0x12e   :  { %v155_v34 = vadd.f32 %v154_v33, %v86_v30 }
 0x12f   :  { %164 = vst [vmem:[#allocation8 + $0x8] sm:$0xff] %v160_v32 }
 0x130   :  { %163 = vst [vmem:[#allocation8] sm:$0xff] %v155_v34 }
 0x131   :  { %352 = shalt.err (!%p349_p0)
}
 0x132   :  { %s353_s6 = scalar_lea.hbm %s474_s4, 256 }
 0x133   :  { %p354_p1 = scmp.ne.s32.totalorder %s474_s4, %s353_s6  ;;  %p357_p2 = scmp.lt.u32.totalorder %s353_s6, %s474_s4 }
 0x135   :  { %p359_p3 = pnand %p357_p2, %p354_p1 }
 0x137   :  { %362 = shalt.err (!%p359_p3)
}
 0x138   :  { %176 = dma.vmem_to_hbm [thread:$0]  %s171_s29, 256, %s474_s4, [#allocation4], %s371_s27, %s371_s27, %s372_s28  }
 0x139   :  { %367 = dma.done.wait [#allocation4], 256  }
 0x13a   :  { %368 = vsyncadd [#allocation4], 4294967040 }
 0x13b   :  { %180 = vsyncpa [#allocation3], 1 }
 0x13c   :  { %181 = vsyncpa [#allocation6], 1 }
 0x13d   :  { %182 = vsyncpa [#allocation4], 1 }

</bundles_post_ra>
